<compile_context>
chip_gen: v6e
topology: v6e:2x2x1
jax: 0.10.0
libtpu: 0.0.40
codegen_flags: <defaults>
</compile_context>

<pallas_src>
import jax
import jax.numpy as jnp
from jax.experimental import pallas as pl
from jax.experimental.pallas import tpu as pltpu

EPS = 1e-5
_MIB = 1024 * 1024


def head_kernel(x_ref, w_ref, b_ref, o_ref):
    # x_ref: (n_tile, HW, C)  feature-map tile feeding norm5 (NHWC, spatial flattened)
    # w_ref: (C, Cp)          folded classifier weight (norm5-BN * bottleneck-BN * 1/HW applied)
    # b_ref: (1, Cp)          folded bias
    # o_ref: (n_tile, Cp)     logits tile
    x = x_ref[...].astype(jnp.float32)
    pooled = jnp.sum(x, axis=1)                                 # sublane/VPU reduce; C lane-dense
    o_ref[...] = jnp.dot(pooled, w_ref[...],
                         preferred_element_type=jnp.float32) + b_ref[...]


def _round_up(v, m):
    return ((v + m - 1) // m) * m


def _vmem_capacity_bytes():
    try:
        return int(pltpu.get_tpu_info().vmem_capacity_bytes)
    except Exception:
        return 64 * _MIB                        # conservative fallback (v7x per-TensorCore)


def ft_net_dense_head(x_nhwc, params, class_num):
    """x_nhwc: (N, H, W, 1024) feature map feeding densenet.features.norm5 (NHWC layout)."""
    N, H, W, C = x_nhwc.shape
    HW = H * W
    x = x_nhwc.reshape(N, HW, C)                # free reshape of NHWC, no HBM copy

    rm5, rv5, g5, b5, rm1, rv1, g1, b1, w = [jnp.asarray(p, jnp.float32) for p in params]
    rm5, rv5, g5, b5 = (p.reshape(C) for p in (rm5, rv5, g5, b5))
    rm1, rv1, g1, b1 = (p.reshape(C) for p in (rm1, rv1, g1, b1))

    # --- fold norm5 BN2d, mean (1/HW) and bottleneck BN1d into the classifier weight + bias ---
    s5 = g5 * jax.lax.rsqrt(rv5 + EPS)
    s1 = g1 * jax.lax.rsqrt(rv1 + EPS)
    scale = s5 * s1 / HW                        # applied to sum_spatial(x)
    shift = (b5 - rm5 * s5 - rm1) * s1 + b1     # (C,)
    w_t = w.T                                   # (class_num, C) -> (C, class_num)

    cp = _round_up(class_num, 128)              # lane-dense output, zero-padded columns
    w_eff = jnp.zeros((C, cp), jnp.float32).at[:, :class_num].set(scale[:, None] * w_t)
    b_eff = jnp.zeros((1, cp), jnp.float32).at[:, :class_num].set(shift @ w_t)

    # --- generation-aware batch tiling ---
    vmem = _vmem_capacity_bytes()
    if vmem >= 96 * _MIB:                       # v5e / v6e: 128 MiB physical VMEM
        tile_budget, vmem_limit, min_steps = 24 * _MIB, 64 * _MIB, 1
    else:                                       # v7x (64 MiB per TC, 2 TCs) or unknown
        tile_budget, vmem_limit, min_steps = 10 * _MIB, 48 * _MIB, 4

    bytes_per_row = HW * C * x.dtype.itemsize
    n_tile = max(1, tile_budget // bytes_per_row)
    n_tile = max(8, (n_tile // 8) * 8)
    if min_steps > 1 and N > min_steps * 8:     # keep >= min_steps grid steps for megacore sharding
        n_tile = min(n_tile, max(8, _round_up(-(-N // min_steps), 8)))
    if N <= n_tile:
        n_tile = N                              # single exact block, no boundary handling needed
    n_pad = _round_up(N, n_tile)                # output-only padding: fresh pallas_call allocation,
    grid = (n_pad // n_tile,)                   # the input x is NOT copied/padded on the host

    cost = pl.CostEstimate(
        flops=2 * N * C * cp + N * C * HW,
        transcendentals=0,
        bytes_accessed=N * C * HW * x.dtype.itemsize + C * cp * 4 + n_pad * cp * 4,
    )

    out = pl.pallas_call(
        head_kernel,
        out_shape=jax.ShapeDtypeStruct((n_pad, cp), jnp.float32),
        grid=grid,
        in_specs=[
            pl.BlockSpec((n_tile, HW, C), lambda i: (i, 0, 0)),   # streamed feature tiles
            pl.BlockSpec((C, cp), lambda i: (0, 0)),              # resident folded weight
            pl.BlockSpec((1, cp), lambda i: (0, 0)),              # resident folded bias
        ],
        out_specs=pl.BlockSpec((n_tile, cp), lambda i: (i, 0)),
        compiler_params=pltpu.CompilerParams(
            dimension_semantics=("parallel",),
            vmem_limit_bytes=vmem_limit,
        ),
        cost_estimate=cost,
    )(x, w_eff, b_eff)
    return out[:N, :class_num]


def reference(x_nchw, params):
    """Pure-JAX reference of the same fused head (BN -> pool -> BN -> linear, unfolded, NCHW)."""
    rm5, rv5, g5, b5, rm1, rv1, g1, b1, w = params
    N, C, H, W = x_nchw.shape
    y = (x_nchw - rm5.reshape(1, C, 1, 1)) * (
        g5.reshape(1, C, 1, 1) * jax.lax.rsqrt(rv5.reshape(1, C, 1, 1) + EPS)
    ) + b5.reshape(1, C, 1, 1)
    pooled = jnp.mean(y, axis=(2, 3))                                       # (N, C)
    feat = (pooled - rm1.reshape(1, C)) * (
        g1.reshape(1, C) * jax.lax.rsqrt(rv1.reshape(1, C) + EPS)
    ) + b1.reshape(1, C)
    return feat @ w.T


if __name__ == "__main__":
    N, C, H, W = 2, 1024, 8, 8          # 1024 channels fixed by densenet121 / ClassBlock(1024, ...)
    class_num = 128

    key = jax.random.PRNGKey(0)
    ks = jax.random.split(key, 6)

    x_nchw = jax.random.normal(ks[0], (N, C, H, W), jnp.float32)

    # norm5 (synthetic deterministic stand-in for pretrained BatchNorm2d stats/params)
    g5 = 1.0 + 0.1 * jax.random.normal(ks[1], (1, C), jnp.float32)
    b5 = 0.1 * jax.random.normal(ks[2], (1, C), jnp.float32)
    rm5 = 0.05 * jax.random.normal(ks[3], (1, C), jnp.float32)
    rv5 = 1.0 + 0.1 * jax.random.uniform(ks[4], (1, C), jnp.float32)

    # ClassBlock.bottleneck: weights_init_kaiming -> gamma=1, beta=0; fresh running stats
    g1 = jnp.ones((1, C), jnp.float32)
    b1 = jnp.zeros((1, C), jnp.float32)
    rm1 = jnp.zeros((1, C), jnp.float32)
    rv1 = jnp.ones((1, C), jnp.float32)

    # ClassBlock.classifier: nn.Linear(1024, class_num, bias=False), init normal std=0.001
    w = 0.001 * jax.random.normal(ks[5], (class_num, C), jnp.float32)

    params = (rm5, rv5, g5, b5, rm1, rv1, g1, b1, w)

    # In production the DenseNet trunk emits NHWC (XLA-TPU-preferred), so this transpose is free
    # there; it exists here only because the synthetic feature map is built NCHW per the spec.
    x_nhwc = jnp.transpose(x_nchw, (0, 2, 3, 1))

    out = jax.block_until_ready(ft_net_dense_head(x_nhwc, params, class_num))
    ref = reference(x_nchw, params)
    assert out.shape == (N, class_num)
    assert jnp.allclose(out, ref, rtol=1e-4, atol=1e-5), "f32 mismatch vs pure-JAX reference"

    # bf16-streamed activations (halved HBM traffic); kernel still accumulates in f32.
    x_bf16 = x_nhwc.astype(jnp.bfloat16)
    out_bf = jax.block_until_ready(ft_net_dense_head(x_bf16, params, class_num))
    ref_bf = reference(jnp.transpose(x_bf16.astype(jnp.float32), (0, 3, 1, 2)), params)
    assert jnp.allclose(out_bf, ref_bf, rtol=1e-3, atol=1e-4), "bf16 mismatch vs pure-JAX reference"

    print("KERNEL_OK")
</pallas_src>

<mosaic_0001>
module attributes {stable_mosaic.version = 11 : i64} {
  func.func @head_kernel(%arg0: i32, %arg1: memref<2x64x1024xf32, #tpu.memory_space<vmem>>, %arg2: memref<1024x128xf32, #tpu.memory_space<vmem>>, %arg3: memref<1x128xf32, #tpu.memory_space<vmem>>, %arg4: memref<2x128xf32, #tpu.memory_space<vmem>>) attributes {dimension_semantics = [#tpu.dimension_semantics<parallel>], iteration_bounds = array<i64: 1>, scalar_prefetch = 0 : i64, scratch_operands = 0 : i64, tpu.core_type = #tpu.core_type<tc>, window_params = [{transform_indices = @transform_0, window_bounds = array<i64: 2, 64, 1024>}, {pipeline_mode = #tpu.pipeline_mode<synchronous>, transform_indices = @transform_1, window_bounds = array<i64: 1024, 128>}, {pipeline_mode = #tpu.pipeline_mode<synchronous>, transform_indices = @transform_2, window_bounds = array<i64: 1, 128>}, {transform_indices = @transform_3, window_bounds = array<i64: 2, 128>}]} {
    %c0 = arith.constant 0 : index
    %c0_0 = arith.constant 0 : index
    %c0_1 = arith.constant 0 : index
    %0 = vector.load %arg1[%c0, %c0_0, %c0_1] : memref<2x64x1024xf32, #tpu.memory_space<vmem>>, vector<2x64x1024xf32>
    %cst = arith.constant dense<0.000000e+00> : vector<2x1024xf32>
    %1 = vector.multi_reduction <add>, %0, %cst [1] : vector<2x64x1024xf32> to vector<2x1024xf32>
    %c0_2 = arith.constant 0 : index
    %c0_3 = arith.constant 0 : index
    %2 = vector.load %arg2[%c0_2, %c0_3] : memref<1024x128xf32, #tpu.memory_space<vmem>>, vector<1024x128xf32>
    %cst_4 = arith.constant dense<0.000000e+00> : vector<2x128xf32>
    %3 = tpu.matmul %1, %2, %cst_4 {dimension_numbers = #tpu.dot_dimension_numbers<[1], [0], [0], [1], [0, 0, 1, 1], [], []>} : vector<2x1024xf32>, vector<1024x128xf32>, vector<2x128xf32> -> vector<2x128xf32>
    %c0_5 = arith.constant 0 : index
    %c0_6 = arith.constant 0 : index
    %4 = vector.load %arg3[%c0_5, %c0_6] : memref<1x128xf32, #tpu.memory_space<vmem>>, vector<1x128xf32>
    %5 = vector.broadcast %4 : vector<1x128xf32> to vector<2x128xf32>
    %6 = arith.addf %3, %5 : vector<2x128xf32>
    %c0_7 = arith.constant 0 : index
    %c0_8 = arith.constant 0 : index
    %7 = vector.load %arg4[%c0_7, %c0_8] : memref<2x128xf32, #tpu.memory_space<vmem>>, vector<2x128xf32>
    tpu.vector_store %arg4[%c0_7, %c0_8], %6 {strides = array<i32>} : memref<2x128xf32, #tpu.memory_space<vmem>>, vector<2x128xf32>,
    return
  }
  func.func @transform_0(%arg0: i32) -> (i32, i32, i32) {
    %c0_i32 = arith.constant 0 : i32
    %c0_i32_0 = arith.constant 0 : i32
    %c0_i32_1 = arith.constant 0 : i32
    return %arg0, %c0_i32, %c0_i32_0 : i32, i32, i32
  }
  func.func @transform_1(%arg0: i32) -> (i32, i32) {
    %c0_i32 = arith.constant 0 : i32
    %c0_i32_0 = arith.constant 0 : i32
    %c0_i32_1 = arith.constant 0 : i32
    return %c0_i32, %c0_i32_0 : i32, i32
  }
  func.func @transform_2(%arg0: i32) -> (i32, i32) {
    %c0_i32 = arith.constant 0 : i32
    %c0_i32_0 = arith.constant 0 : i32
    %c0_i32_1 = arith.constant 0 : i32
    return %c0_i32, %c0_i32_0 : i32, i32
  }
  func.func @transform_3(%arg0: i32) -> (i32, i32) {
    %c0_i32 = arith.constant 0 : i32
    %c0_i32_0 = arith.constant 0 : i32
    return %arg0, %c0_i32 : i32, i32
  }
}

</mosaic_0001>

<bundles_post_ra>
// kernel: tpu_custom_call.1
= control target key start
LH: loop header
LB: loop body
LE: loop exit
PB: predicated region body
PF: predicated region fallthrough
CT: control target
= control target key end

     0   :  { %8 = vsyncpa [#allocation3], 0  ;;  %s1105_s0 = inlined_call_operand.hbm [shape: f32[2,64,1024], index: 0, kind: input, shape index: {}]   ;;  %s1106_s1 = inlined_call_operand.hbm [shape: f32[1024,128], index: 1, kind: input, shape index: {}]   ;;  %s1107_s2 = inlined_call_operand.vmem [shape: f32[1,128], index: 2, kind: input, shape index: {}]   ;;  %s1108_s3 = inlined_call_operand.hbm [shape: f32[2,128], index: 3, kind: output, shape index: {}]  }
   0x1   :  { %9 = vsyncpa [#allocation6], 0 }
   0x2   :  { %10 = vsyncpa [#allocation4], 0  ;;  %s1058_s12 = smov [#allocation2]  }
   0x3   :  { %s16_s13 = sshll.u32 %s1058_s12, 4  ;;  %s17_s13 = int_to_ptr.vmem [resolvable:$true] %s16_s13 }
   0x4   :  { %s1000_s14 = scalar_lea.vmem %s17_s13, 16384  ;;  %p1005_p1 = scmp.lt.s32.totalorder %s17_s13, %s17_s13 }
   0x5   :  { %p1001_p0 = scmp.ne.s32.totalorder %s17_s13, %s1000_s14  ;;  %p1006_p2 = scmp.lt.s32.totalorder %s1000_s14, %s1000_s14 }
   0x7   :  { %p1007_p3 = por %p1006_p2, %p1005_p1 }
   0x9   :  { %p1008_p4 = pnand %p1007_p3, %p1001_p0 }
   0xb   :  { %1011 = shalt.err (!%p1008_p4)
}
   0xc   :  { %s1059_s15 = smov 1024   ;;  %s1060_s16 = smov 64  }
   0xd   :  { %22 = dma.hbm_to_vmem [thread:$0]  %s1105_s0, 16384, %s17_s13, [#allocation3], %s1059_s15, %s1059_s15, %s1060_s16  }
   0xe   :  { %s1061_s19 = smov [#allocation5]  }
   0xf   :  { %s28_s20 = sshll.u32 %s1061_s19, 4  ;;  %s29_s20 = int_to_ptr.vmem [resolvable:$true] %s28_s20 }
  0x10   :  { %s1020_s21 = scalar_lea.vmem %s29_s20, 16384  ;;  %p1025_p6 = scmp.lt.s32.totalorder %s29_s20, %s29_s20 }
  0x11   :  { %p1021_p5 = scmp.ne.s32.totalorder %s29_s20, %s1020_s21  ;;  %p1026_p7 = scmp.lt.s32.totalorder %s1020_s21, %s1020_s21 }
  0x13   :  { %p1027_p8 = por %p1026_p7, %p1025_p6 }
  0x15   :  { %p1028_p9 = pnand %p1027_p8, %p1021_p5 }
  0x17   :  { %1031 = shalt.err (!%p1028_p9)
}
  0x18   :  { %s1062_s22 = smov 128   ;;  %s1063_s23 = smov 8  }
  0x19   :  { %34 = dma.hbm_to_vmem [thread:$0]  %s1106_s1, 16384, %s29_s20, [#allocation6], %s1062_s22, %s1062_s22, %s1063_s23  }
  0x1a   :  { %1052 = dma.done.wait [#allocation3], 16384  }
  0x1b   :  { %1053 = vsyncadd [#allocation3], 4294950912 }
  0x1c   :  { %1054 = dma.done.wait [#allocation6], 16384  }
  0x1d   :  { %1055 = vsyncadd [#allocation6], 4294950912  ;;  %v410_v0 = vld [vmem:[#allocation5 + $0xf8] sm:$0xff]  ;;  %v409_v4 = vld [vmem:[#allocation5 + $0xf0] sm:$0xff]  ;;  %vm530_vm0 = vcmask 1041409   ;;  %s1064_s26 = smov [#allocation7]  }
  0x1e   :  { %v442_v1 = vld [vmem:[#allocation5 + $0x1f8] sm:$0xff]  ;;  %845 = vmatprep.subr.mxu0 %v410_v0  ;;  %v441_v5 = vld [vmem:[#allocation5 + $0x1f0] sm:$0xff]  ;;  %v408_v8 = vld [vmem:[#allocation5 + $0xe8] sm:$0xff]  ;;  %s834_s27 = sshll.u32 %s1064_s26, 4  ;;  %s835_s27 = int_to_ptr.vmem [resolvable:$true] %s834_s27 }
  0x1f   :  { %v394_v2 = vld [vmem:[#allocation5 + $0x78] sm:$0xff]  ;;  %880 = vmatprep.subr.mxu1 %v442_v1  ;;  %v393_v6 = vld [vmem:[#allocation5 + $0x70] sm:$0xff]  ;;  %v440_v9 = vld [vmem:[#allocation5 + $0x1e8] sm:$0xff]  ;;  %s1032_s28 = scalar_lea.vmem %s835_s27, 32  ;;  %p1037_p11 = scmp.lt.s32.totalorder %s835_s27, %s835_s27 }
  0x20   :  { %v426_v3 = vld [vmem:[#allocation5 + $0x178] sm:$0xff]  ;;  %846 = vmatpush3.msra.mxu0 %v394_v2  ;;  %v425_v7 = vld [vmem:[#allocation5 + $0x170] sm:$0xff]  ;;  %v392_v10 = vld [vmem:[#allocation5 + $0x68] sm:$0xff]  ;;  %p1033_p10 = scmp.ne.s32.totalorder %s835_s27, %s1032_s28  ;;  %p1038_p12 = scmp.lt.s32.totalorder %s1032_s28, %s1032_s28 }
  0x21   :  { %881 = vmatpush3.msra.mxu1 %v426_v3  ;;  %847 = vmatprep.subr.mxu0 %v409_v4  ;;  %v424_v11 = vld [vmem:[#allocation5 + $0x168] sm:$0xff]  ;;  %v407_v12 = vld [vmem:[#allocation5 + $0xe0] sm:$0xff]  ;;  %v406_v16 = vld [vmem:[#allocation5 + $0xd8] sm:$0xff] }
  0x22   :  { %882 = vmatprep.subr.mxu1 %v441_v5  ;;  %848 = vmatpush3.msra.mxu0 %v393_v6  ;;  %v439_v13 = vld [vmem:[#allocation5 + $0x1e0] sm:$0xff]  ;;  %v438_v17 = vld [vmem:[#allocation5 + $0x1d8] sm:$0xff]  ;;  %v405_v20 = vld [vmem:[#allocation5 + $0xd0] sm:$0xff]  ;;  %p1039_p13 = por %p1038_p12, %p1037_p11 }
  0x23   :  { %883 = vmatpush3.msra.mxu1 %v425_v7  ;;  %849 = vmatprep.subr.mxu0 %v408_v8  ;;  %v391_v14 = vld [vmem:[#allocation5 + $0x60] sm:$0xff]  ;;  %v390_v18 = vld [vmem:[#allocation5 + $0x58] sm:$0xff]  ;;  %v437_v21 = vld [vmem:[#allocation5 + $0x1d0] sm:$0xff] }
  0x24   :  { %884 = vmatprep.subr.mxu1 %v440_v9  ;;  %v423_v15 = vld [vmem:[#allocation5 + $0x160] sm:$0xff]  ;;  %850 = vmatpush3.msra.mxu0 %v392_v10  ;;  %v422_v19 = vld [vmem:[#allocation5 + $0x158] sm:$0xff]  ;;  %v389_v22 = vld [vmem:[#allocation5 + $0x50] sm:$0xff]  ;;  %p1040_p0 = pnand %p1039_p13, %p1033_p10 }
  0x25   :  { %885 = vmatpush3.msra.mxu1 %v424_v11  ;;  %851 = vmatprep.subr.mxu0 %v407_v12  ;;  %v421_v23 = vld [vmem:[#allocation5 + $0x150] sm:$0xff]  ;;  %v404_v24 = vld [vmem:[#allocation5 + $0xc8] sm:$0xff]  ;;  %v403_v28 = vld [vmem:[#allocation5 + $0xc0] sm:$0xff] }
  0x26   :  { %886 = vmatprep.subr.mxu1 %v439_v13  ;;  %852 = vmatpush3.msra.mxu0 %v391_v14  ;;  %v436_v25 = vld [vmem:[#allocation5 + $0x1c8] sm:$0xff]  ;;  %v435_v29 = vld [vmem:[#allocation5 + $0x1c0] sm:$0xff]  ;;  %v402_v32 = vld [vmem:[#allocation5 + $0xb8] sm:$0xff] }
  0x27   :  { %887 = vmatpush3.msra.mxu1 %v423_v15  ;;  %853 = vmatprep.subr.mxu0 %v406_v16  ;;  %v388_v26 = vld [vmem:[#allocation5 + $0x48] sm:$0xff]  ;;  %v387_v30 = vld [vmem:[#allocation5 + $0x40] sm:$0xff]  ;;  %v434_v33 = vld [vmem:[#allocation5 + $0x1b8] sm:$0xff] }
  0x28   :  { %888 = vmatprep.subr.mxu1 %v438_v17  ;;  %854 = vmatpush3.msra.mxu0 %v390_v18  ;;  %v420_v27 = vld [vmem:[#allocation5 + $0x148] sm:$0xff]  ;;  %v419_v31 = vld [vmem:[#allocation5 + $0x140] sm:$0xff]  ;;  %v386_v34 = vld [vmem:[#allocation5 + $0x38] sm:$0xff] }
  0x29   :  { %889 = vmatpush3.msra.mxu1 %v422_v19  ;;  %855 = vmatprep.subr.mxu0 %v405_v20  ;;  %v418_v35 = vld [vmem:[#allocation5 + $0x138] sm:$0xff]  ;;  %v401_v36 = vld [vmem:[#allocation5 + $0xb0] sm:$0xff]  ;;  %v400_v40 = vld [vmem:[#allocation5 + $0xa8] sm:$0xff] }
  0x2a   :  { %890 = vmatprep.subr.mxu1 %v437_v21  ;;  %856 = vmatpush3.msra.mxu0 %v389_v22  ;;  %v433_v37 = vld [vmem:[#allocation5 + $0x1b0] sm:$0xff]  ;;  %v432_v41 = vld [vmem:[#allocation5 + $0x1a8] sm:$0xff]  ;;  %v399_v44 = vld [vmem:[#allocation5 + $0xa0] sm:$0xff] }
  0x2b   :  { %891 = vmatpush3.msra.mxu1 %v421_v23  ;;  %857 = vmatprep.subr.mxu0 %v404_v24  ;;  %v385_v38 = vld [vmem:[#allocation5 + $0x30] sm:$0xff]  ;;  %v384_v42 = vld [vmem:[#allocation5 + $0x28] sm:$0xff]  ;;  %v431_v45 = vld [vmem:[#allocation5 + $0x1a0] sm:$0xff] }
  0x2c   :  { %892 = vmatprep.subr.mxu1 %v436_v25  ;;  %858 = vmatpush3.msra.mxu0 %v388_v26  ;;  %v417_v39 = vld [vmem:[#allocation5 + $0x130] sm:$0xff]  ;;  %v416_v43 = vld [vmem:[#allocation5 + $0x128] sm:$0xff]  ;;  %v383_v46 = vld [vmem:[#allocation5 + $0x20] sm:$0xff] }
  0x2d   :  { %893 = vmatpush3.msra.mxu1 %v420_v27  ;;  %859 = vmatprep.subr.mxu0 %v403_v28  ;;  %v415_v47 = vld [vmem:[#allocation5 + $0x120] sm:$0xff]  ;;  %v398_v48 = vld [vmem:[#allocation5 + $0x98] sm:$0xff]  ;;  %v44_v51 = vld [vmem:[#allocation2 + $0x8] sm:$0xff] }
  0x2e   :  { %894 = vmatprep.subr.mxu1 %v435_v29  ;;  %860 = vmatpush3.msra.mxu0 %v387_v30  ;;  %v430_v49 = vld [vmem:[#allocation5 + $0x198] sm:$0xff]  ;;  %v52_v52 = vld [vmem:[#allocation2 + $0x48] sm:$0xff]  ;;  %v397_v55 = vld [vmem:[#allocation5 + $0x90] sm:$0xff] }
  0x2f   :  { %895 = vmatpush3.msra.mxu1 %v419_v31  ;;  %861 = vmatprep.subr.mxu0 %v402_v32  ;;  %v382_v50 = vld [vmem:[#allocation5 + $0x18] sm:$0xff]  ;;  %v60_v53 = vld [vmem:[#allocation2 + $0x88] sm:$0xff]  ;;  %v429_v56 = vld [vmem:[#allocation5 + $0x190] sm:$0xff]  ;;  %v184_v57 = vadd.f32 %v52_v52, %v44_v51 }
  0x30   :  { %896 = vmatprep.subr.mxu1 %v434_v33  ;;  %862 = vmatpush3.msra.mxu0 %v386_v34  ;;  %v414_v54 = vld [vmem:[#allocation5 + $0x118] sm:$0xff]  ;;  %v381_v58 = vld [vmem:[#allocation5 + $0x10] sm:$0xff]  ;;  %v68_v60 = vld [vmem:[#allocation2 + $0xc8] sm:$0xff] }
  0x31   :  { %897 = vmatpush3.msra.mxu1 %v418_v35  ;;  %863 = vmatprep.subr.mxu0 %v401_v36  ;;  %v413_v59 = vld [vmem:[#allocation5 + $0x110] sm:$0xff]  ;;  %v108_v61 = vld [vmem:[#allocation2 + $0x208] sm:$0xff]  ;;  %v185_v2 = vadd.f32 %v184_v57, %v60_v53  ;;  %v395_v7 = vld [vmem:[#allocation5 + $0x80] sm:$0xff] }
  0x32   :  { %898 = vmatprep.subr.mxu1 %v433_v37  ;;  %864 = vmatpush3.msra.mxu0 %v385_v38  ;;  %v396_v62 = vld [vmem:[#allocation5 + $0x88] sm:$0xff]  ;;  %v427_v8 = vld [vmem:[#allocation5 + $0x180] sm:$0xff]  ;;  %v70_v51 = vld [vmem:[#allocation2 + $0xd8] sm:$0xff] }
  0x33   :  { %899 = vmatpush3.msra.mxu1 %v417_v39  ;;  %865 = vmatprep.subr.mxu0 %v400_v40  ;;  %v428_v63 = vld [vmem:[#allocation5 + $0x188] sm:$0xff]  ;;  %v186_v10 = vadd.f32 %v185_v2, %v68_v60  ;;  %v43_v11 = vld [vmem:[#allocation2] sm:$0xff]  ;;  %v46_v39 = vld [vmem:[#allocation2 + $0x18] sm:$0xff] }
  0x34   :  { %900 = vmatprep.subr.mxu1 %v432_v41  ;;  %866 = vmatpush3.msra.mxu0 %v384_v42  ;;  %v116_v0 = vld [vmem:[#allocation2 + $0x248] sm:$0xff]  ;;  %v379_v12 = vld [vmem:[#allocation5] sm:$0xff]  ;;  %v54_v40 = vld [vmem:[#allocation2 + $0x58] sm:$0xff] }
  0x35   :  { %901 = vmatpush3.msra.mxu1 %v416_v43  ;;  %867 = vmatprep.subr.mxu0 %v399_v44  ;;  %v124_v1 = vld [vmem:[#allocation2 + $0x288] sm:$0xff]  ;;  %v288_v6 = vadd.f32 %v116_v0, %v108_v61  ;;  %v51_v15 = vld [vmem:[#allocation2 + $0x40] sm:$0xff]  ;;  %v62_v41 = vld [vmem:[#allocation2 + $0x98] sm:$0xff] }
  0x36   :  { %902 = vmatprep.subr.mxu1 %v431_v45  ;;  %868 = vmatpush3.msra.mxu0 %v383_v46  ;;  %v380_v3 = vld [vmem:[#allocation5 + $0x8] sm:$0xff]  ;;  %v59_v16 = vld [vmem:[#allocation2 + $0x80] sm:$0xff]  ;;  %v171_v21 = vadd.f32 %v51_v15, %v43_v11  ;;  %v210_v46 = vadd.f32 %v54_v40, %v46_v39  ;;  %v110_v52 = vld [vmem:[#allocation2 + $0x218] sm:$0xff] }
  0x37   :  { %903 = vmatpush3.msra.mxu1 %v415_v47  ;;  %869 = vmatprep.subr.mxu0 %v398_v48  ;;  %v412_v4 = vld [vmem:[#allocation5 + $0x108] sm:$0xff]  ;;  %v289_v14 = vadd.f32 %v288_v6, %v124_v1  ;;  %v411_v20 = vld [vmem:[#allocation5 + $0x100] sm:$0xff]  ;;  %v126_v57 = vld [vmem:[#allocation2 + $0x298] sm:$0xff] }
  0x38   :  { %904 = vmatprep.subr.mxu1 %v430_v49  ;;  %v76_v5 = vld [vmem:[#allocation2 + $0x108] sm:$0xff]  ;;  %870 = vmatpush3.msra.mxu0 %v382_v50  ;;  %v67_v23 = vld [vmem:[#allocation2 + $0xc0] sm:$0xff]  ;;  %v172_v30 = vadd.f32 %v171_v21, %v59_v16  ;;  %v86_v0 = vld [vmem:[#allocation2 + $0x158] sm:$0xff] }
  0x39   :  { %905 = vmatpush3.msra.mxu1 %v414_v54  ;;  %v132_v9 = vld [vmem:[#allocation2 + $0x2c8] sm:$0xff]  ;;  %871 = vmatprep.subr.mxu0 %v397_v55  ;;  %v187_v19 = vadd.f32 %v186_v10, %v76_v5  ;;  %v107_v24 = vld [vmem:[#allocation2 + $0x200] sm:$0xff]  ;;  %v474_v5 = vld [vmem:[#allocation5 + $0x2f8] sm:$0xff] }
  0x3a   :  { %906 = vmatprep.subr.mxu1 %v429_v56  ;;  %v84_v13 = vld [vmem:[#allocation2 + $0x148] sm:$0xff]  ;;  %872 = vmatpush3.msra.mxu0 %v381_v58  ;;  %v290_v22 = vadd.f32 %v289_v14, %v132_v9  ;;  %v115_v25 = vld [vmem:[#allocation2 + $0x240] sm:$0xff]  ;;  %v173_v37 = vadd.f32 %v172_v30, %v67_v23  ;;  %v118_v56 = vld [vmem:[#allocation2 + $0x258] sm:$0xff]  ;;  %v211_v58 = vadd.f32 %v210_v46, %v62_v41 }
  0x3b   :  { %907 = vmatpush3.msra.mxu1 %v413_v59  ;;  %v92_v17 = vld [vmem:[#allocation2 + $0x188] sm:$0xff]  ;;  %873 = vmatprep.subr.mxu0 %v396_v62  ;;  %v188_v28 = vadd.f32 %v187_v19, %v84_v13  ;;  %v123_v29 = vld [vmem:[#allocation2 + $0x280] sm:$0xff]  ;;  %v275_v31 = vadd.f32 %v115_v25, %v107_v24  ;;  %v314_v1 = vadd.f32 %v118_v56, %v110_v52  ;;  %v506_v6 = vld [vmem:[#allocation5 + $0x3f8] sm:$0xff] }
  0x3c   :  { %v140_v18 = vld [vmem:[#allocation2 + $0x308] sm:$0xff]  ;;  %908 = vmatprep.subr.mxu1 %v428_v63  ;;  %874 = vmatpush3.msra.mxu0 %v380_v3  ;;  %v75_v34 = vld [vmem:[#allocation2 + $0x100] sm:$0xff]  ;;  %v78_v63 = vld [vmem:[#allocation2 + $0x118] sm:$0xff] }
  0x3d   :  { %909 = vmatpush3.msra.mxu1 %v412_v4  ;;  %v100_v26 = vld [vmem:[#allocation2 + $0x1c8] sm:$0xff]  ;;  %875 = vmatprep.subr.mxu0 %v395_v7  ;;  %v291_v33 = vadd.f32 %v290_v22, %v140_v18  ;;  %v131_v35 = vld [vmem:[#allocation2 + $0x2c0] sm:$0xff]  ;;  %v189_v36 = vadd.f32 %v188_v28, %v92_v17  ;;  %v276_v38 = vadd.f32 %v275_v31, %v123_v29  ;;  %v134_v3 = vld [vmem:[#allocation2 + $0x2d8] sm:$0xff] }
  0x3e   :  { %v148_v27 = vld [vmem:[#allocation2 + $0x348] sm:$0xff]  ;;  %910 = vmatprep.subr.mxu1 %v427_v8  ;;  %876 = vmatpush3.msra.mxu0 %v379_v12  ;;  %v83_v44 = vld [vmem:[#allocation2 + $0x140] sm:$0xff]  ;;  %v174_v49 = vadd.f32 %v173_v37, %v75_v34  ;;  %v212_v4 = vadd.f32 %v211_v58, %v70_v51  ;;  %v315_v10 = vadd.f32 %v314_v1, %v126_v57  ;;  %v45_v11 = vld [vmem:[#allocation2 + $0x10] sm:$0xff] }
  0x3f   :  { %v156_v32 = vld [vmem:[#allocation2 + $0x388] sm:$0xff]  ;;  %911 = vmatpush3.msra.mxu1 %v411_v20  ;;  %v292_v43 = vadd.f32 %v291_v33, %v148_v27  ;;  %v139_v45 = vld [vmem:[#allocation2 + $0x300] sm:$0xff]  ;;  %v190_v47 = vadd.f32 %v189_v36, %v100_v26  ;;  %v277_v50 = vadd.f32 %v276_v38, %v131_v35  ;;  %915 = vmatprep.subr.mxu0 %v474_v5  ;;  %v53_v12 = vld [vmem:[#allocation2 + $0x50] sm:$0xff] }
  0x40   :  { %v164_v42 = vld [vmem:[#allocation2 + $0x3c8] sm:$0xff]  ;;  %v91_v48 = vld [vmem:[#allocation2 + $0x180] sm:$0xff]  ;;  %v175_v61 = vadd.f32 %v174_v49, %v83_v44  ;;  %v61_v13 = vld [vmem:[#allocation2 + $0x90] sm:$0xff]  ;;  %v213_v17 = vadd.f32 %v212_v4, %v78_v63  ;;  %950 = vmatprep.subr.mxu1 %v506_v6  ;;  %v197_v18 = vadd.f32 %v53_v12, %v45_v11  ;;  %v316_v23 = vadd.f32 %v315_v10, %v134_v3 }
  0x41   :  { %v293_v53 = vadd.f32 %v292_v43, %v156_v32  ;;  %v99_v54 = vld [vmem:[#allocation2 + $0x1c0] sm:$0xff]  ;;  %v191_v59 = vrot.slane %v190_v47, 4  ;;  %v278_v62 = vadd.f32 %v277_v50, %v139_v45  ;;  %v142_v16 = vld [vmem:[#allocation2 + $0x318] sm:$0xff]  ;;  %v69_v24 = vld [vmem:[#allocation2 + $0xd0] sm:$0xff] }
  0x42   :  { %v147_v55 = vld [vmem:[#allocation2 + $0x340] sm:$0xff]  ;;  %v176_v8 = vadd.f32 %v175_v61, %v91_v48  ;;  %v94_v22 = vld [vmem:[#allocation2 + $0x198] sm:$0xff]  ;;  %v109_v25 = vld [vmem:[#allocation2 + $0x210] sm:$0xff]  ;;  %v214_v28 = vadd.f32 %v213_v17, %v86_v0  ;;  %v198_v30 = vadd.f32 %v197_v18, %v61_v13  ;;  %v317_v35 = vadd.f32 %v316_v23, %v142_v16 }
  0x43   :  { %v155_v60 = vld [vmem:[#allocation2 + $0x380] sm:$0xff]  ;;  %v294_v2 = vadd.f32 %v293_v53, %v164_v42  ;;  %v192_v7 = vadd.f32 %v191_v59, %v190_v47  ;;  %v279_v9 = vadd.f32 %v278_v62, %v147_v55  ;;  %v150_v27 = vld [vmem:[#allocation2 + $0x358] sm:$0xff]  ;;  %v117_v29 = vld [vmem:[#allocation2 + $0x250] sm:$0xff] }
  0x44   :  { %v163_v15 = vld [vmem:[#allocation2 + $0x3c0] sm:$0xff]  ;;  %v177_v20 = vadd.f32 %v176_v8, %v99_v54  ;;  %v102_v34 = vld [vmem:[#allocation2 + $0x1d8] sm:$0xff]  ;;  %v77_v36 = vld [vmem:[#allocation2 + $0x110] sm:$0xff]  ;;  %v215_v40 = vadd.f32 %v214_v28, %v94_v22  ;;  %v199_v41 = vadd.f32 %v198_v30, %v69_v24  ;;  %v301_v42 = vadd.f32 %v117_v29, %v109_v25 }
  0x45   :  { %v295_v14 = vrot.slane %v294_v2, 4  ;;  %v193_v19 = vrot.slane %v192_v7, 2  ;;  %v280_v21 = vadd.f32 %v279_v9, %v155_v60  ;;  %v125_v37 = vld [vmem:[#allocation2 + $0x290] sm:$0xff]  ;;  %v158_v39 = vld [vmem:[#allocation2 + $0x398] sm:$0xff]  ;;  %v318_v46 = vadd.f32 %v317_v35, %v150_v27 }
  0x46   :  { %v178_v32 = vrot.slane %v177_v20, 4  ;;  %v85_v47 = vld [vmem:[#allocation2 + $0x150] sm:$0xff]  ;;  %v166_v50 = vld [vmem:[#allocation2 + $0x3d8] sm:$0xff]  ;;  %v216_v51 = vadd.f32 %v215_v40, %v102_v34  ;;  %v200_v52 = vadd.f32 %v199_v41, %v77_v36  ;;  %v302_v53 = vadd.f32 %v301_v42, %v125_v37  ;;  %v456_v41 = vld [vmem:[#allocation5 + $0x268] sm:$0xff] }
  0x47   :  { %v296_v26 = vadd.f32 %v295_v14, %v294_v2  ;;  %v194_v31 = vadd.f32 %v193_v19, %v192_v7  ;;  %v281_v33 = vadd.f32 %v280_v21, %v163_v15  ;;  %v133_v48 = vld [vmem:[#allocation2 + $0x2d0] sm:$0xff]  ;;  %v319_v57 = vadd.f32 %v318_v46, %v158_v39  ;;  %v458_v29 = vld [vmem:[#allocation5 + $0x278] sm:$0xff]  ;;  %v455_v46 = vld [vmem:[#allocation5 + $0x260] sm:$0xff] }
  0x48   :  { %v179_v44 = vadd.f32 %v178_v32, %v177_v20  ;;  %v93_v58 = vld [vmem:[#allocation2 + $0x190] sm:$0xff]  ;;  %v217_v61 = vrot.slane %v216_v51, 4  ;;  %v201_v62 = vadd.f32 %v200_v52, %v85_v47  ;;  %v303_v63 = vadd.f32 %v302_v53, %v133_v48  ;;  %v470_v48 = vld [vmem:[#allocation5 + $0x2d8] sm:$0xff]  ;;  %v56_v53 = vld [vmem:[#allocation2 + $0x68] sm:$0xff] }
  0x49   :  { %v297_v38 = vrot.slane %v296_v26, 2  ;;  %v195_v43 = vrot.slane %v194_v31, 1  ;;  %v282_v45 = vrot.slane %v281_v33, 4  ;;  %v141_v59 = vld [vmem:[#allocation2 + $0x310] sm:$0xff]  ;;  %v320_v2 = vadd.f32 %v319_v57, %v166_v50  ;;  %v454_v50 = vld [vmem:[#allocation5 + $0x258] sm:$0xff] }
  0x4a   :  { %v180_v55 = vrot.slane %v179_v44, 2  ;;  %v101_v3 = vld [vmem:[#allocation2 + $0x1d0] sm:$0xff]  ;;  %v218_v6 = vadd.f32 %v217_v61, %v216_v51  ;;  %v202_v7 = vadd.f32 %v201_v62, %v93_v58  ;;  %v304_v8 = vadd.f32 %v303_v63, %v141_v59  ;;  %v48_v51 = vld [vmem:[#allocation2 + $0x28] sm:$0xff]  ;;  %v490_v61 = vld [vmem:[#allocation5 + $0x378] sm:$0xff] }
  0x4b   :  { %v298_v49 = vadd.f32 %v297_v38, %v296_v26  ;;  %v196_v54 = vadd.f32 %v195_v43, %v194_v31  ;;  %v283_v56 = vadd.f32 %v282_v45, %v281_v33  ;;  %v149_v4 = vld [vmem:[#allocation2 + $0x350] sm:$0xff]  ;;  %v321_v11 = vrot.slane %v320_v2, 4  ;;  %v472_v38 = vld [vmem:[#allocation5 + $0x2e8] sm:$0xff]  ;;  %v471_v43 = vld [vmem:[#allocation5 + $0x2e0] sm:$0xff] }
  0x4c   :  { %v181_v0 = vadd.f32 %v180_v55, %v179_v44  ;;  %v157_v12 = vld [vmem:[#allocation2 + $0x390] sm:$0xff]  ;;  %v219_v14 = vrot.slane %v218_v6, 2  ;;  %v203_v15 = vadd.f32 %v202_v7, %v101_v3  ;;  %v305_v16 = vadd.f32 %v304_v8, %v149_v4  ;;  %v468_v58 = vld [vmem:[#allocation5 + $0x2c8] sm:$0xff]  ;;  %v467_v3 = vld [vmem:[#allocation5 + $0x2c0] sm:$0xff] }
  0x4d   :  { %v299_v60 = vrot.slane %v298_v49, 1  ;;  %v284_v1 = vrot.slane %v283_v56, 2  ;;  %v322_v19 = vadd.f32 %v321_v11, %v320_v2  ;;  %v165_v20 = vld [vmem:[#allocation2 + $0x3d0] sm:$0xff]  ;;  %v452_v59 = vld [vmem:[#allocation5 + $0x248] sm:$0xff]  ;;  %v451_v4 = vld [vmem:[#allocation5 + $0x240] sm:$0xff] }
  0x4e   :  { %v182_v9 = vrot.slane %v181_v0, 1  ;;  %v220_v21 = vadd.f32 %v219_v14, %v218_v6  ;;  %v204_v22 = vrot.slane %v203_v15, 4  ;;  %v306_v23 = vadd.f32 %v305_v16, %v157_v12  ;;  %v473_v32 = vld [vmem:[#allocation5 + $0x2f0] sm:$0xff]  ;;  %v72_v62 = vld [vmem:[#allocation2 + $0xe8] sm:$0xff]  ;;  %v450_v14 = vld [vmem:[#allocation5 + $0x238] sm:$0xff] }
  0x4f   :  { %v300_v5 = vadd.f32 %v299_v60, %v298_v49  ;;  %v285_v10 = vadd.f32 %v284_v1, %v283_v56  ;;  %v323_v25 = vrot.slane %v322_v19, 2  ;;  %v457_v35 = vld [vmem:[#allocation5 + $0x270] sm:$0xff]  ;;  %v236_v60 = vadd.f32 %v56_v53, %v48_v51  ;;  %v112_v63 = vld [vmem:[#allocation2 + $0x228] sm:$0xff] }
  0x50   :  { %v183_v17 = vadd.f32 %v182_v9, %v181_v0  ;;  %v221_v26 = vrot.slane %v220_v21, 1  ;;  %v205_v27 = vadd.f32 %v204_v22, %v203_v15  ;;  %v307_v28 = vadd.f32 %v306_v23, %v165_v20  ;;  %v469_v52 = vld [vmem:[#allocation5 + $0x2d0] sm:$0xff]  ;;  %v120_v0 = vld [vmem:[#allocation2 + $0x268] sm:$0xff]  ;;  %v466_v9 = vld [vmem:[#allocation5 + $0x2b8] sm:$0xff] }
  0x51   :  { %v532_v13 = vsel %vm530_vm0, %v300_v5, %v196_v54  ;;  %v286_v18 = vrot.slane %v285_v10, 1  ;;  %v324_v31 = vadd.f32 %v323_v25, %v322_v19  ;;  %v64_v54 = vld [vmem:[#allocation2 + $0xa8] sm:$0xff]  ;;  %v453_v57 = vld [vmem:[#allocation5 + $0x250] sm:$0xff]  ;;  %v340_v7 = vadd.f32 %v120_v0, %v112_v63  ;;  %v66_v23 = vld [vmem:[#allocation2 + $0xb8] sm:$0xff] }
  0x52   :  { %611 = vmatprep.mubr.f32.mxu0 %v532_v13  ;;  %v206_v33 = vrot.slane %v205_v27, 2  ;;  %v308_v34 = vrot.slane %v307_v28, 4  ;;  %v222_v36 = vadd.f32 %v221_v26, %v220_v21  ;;  %v505_v2 = vld [vmem:[#allocation5 + $0x3f0] sm:$0xff]  ;;  %v128_v5 = vld [vmem:[#allocation2 + $0x2a8] sm:$0xff]  ;;  %v237_v6 = vadd.f32 %v236_v60, %v64_v54  ;;  %v503_v25 = vld [vmem:[#allocation5 + $0x3e0] sm:$0xff] }
  0x53   :  { %v287_v24 = vadd.f32 %v286_v18, %v285_v10  ;;  %v325_v37 = vrot.slane %v324_v31, 1  ;;  %v489_v8 = vld [vmem:[#allocation5 + $0x370] sm:$0xff]  ;;  %v80_v10 = vld [vmem:[#allocation2 + $0x128] sm:$0xff]  ;;  %v341_v16 = vadd.f32 %v340_v7, %v128_v5  ;;  %v58_v18 = vld [vmem:[#allocation2 + $0x78] sm:$0xff] }
  0x54   :  { %v207_v39 = vadd.f32 %v206_v33, %v205_v27  ;;  %v309_v40 = vadd.f32 %v308_v34, %v307_v28  ;;  %v136_v11 = vld [vmem:[#allocation2 + $0x2e8] sm:$0xff]  ;;  %v238_v15 = vadd.f32 %v237_v6, %v72_v62  ;;  %v465_v20 = vld [vmem:[#allocation5 + $0x2b0] sm:$0xff]  ;;  %v114_v34 = vld [vmem:[#allocation2 + $0x238] sm:$0xff] }
  0x55   :  { %v531_v30 = vsel %vm530_vm0, %v287_v24, %v183_v17  ;;  %v326_v42 = vadd.f32 %v325_v37, %v324_v31  ;;  %v504_v13 = vld [vmem:[#allocation5 + $0x3e8] sm:$0xff]  ;;  %v50_v17 = vld [vmem:[#allocation2 + $0x38] sm:$0xff]  ;;  %v449_v26 = vld [vmem:[#allocation5 + $0x230] sm:$0xff] }
  0x56   :  { %612 = vmatmul.mubr.f32.vlgmr.msra.gmra.mxu0 %v531_v30  ;;  %v208_v44 = vrot.slane %v207_v39, 1  ;;  %v310_v45 = vrot.slane %v309_v40, 2  ;;  %v488_v19 = vld [vmem:[#allocation5 + $0x368] sm:$0xff]  ;;  %v262_v24 = vadd.f32 %v58_v18, %v50_v17  ;;  %v342_v30 = vadd.f32 %v341_v16, %v136_v11  ;;  %v74_v31 = vld [vmem:[#allocation2 + $0xf8] sm:$0xff]  ;;  %v501_v51 = vld [vmem:[#allocation5 + $0x3d0] sm:$0xff] }
  0x57   :  { %916 = vmatpush3.msra.mxu0 %v458_v29  ;;  %v534_v47 = vsel %vm530_vm0, %v326_v42, %v222_v36  ;;  %v88_v21 = vld [vmem:[#allocation2 + $0x168] sm:$0xff]  ;;  %v239_v29 = vadd.f32 %v238_v15, %v80_v10  ;;  %v130_v36 = vld [vmem:[#allocation2 + $0x2b8] sm:$0xff]  ;;  %v71_v7 = vld [vmem:[#allocation2 + $0xe0] sm:$0xff] }
  0x58   :  { %917 = vmatprep.subr.mxu0 %v473_v32  ;;  %681 = vmatprep.mubr.f32.mxu1 %v534_v47  ;;  %v311_v49 = vadd.f32 %v310_v45, %v309_v40  ;;  %v209_v55 = vadd.f32 %v208_v44, %v207_v39  ;;  %v144_v22 = vld [vmem:[#allocation2 + $0x328] sm:$0xff]  ;;  %v487_v32 = vld [vmem:[#allocation5 + $0x360] sm:$0xff]  ;;  %v263_v37 = vadd.f32 %v262_v24, %v66_v23  ;;  %v486_v45 = vld [vmem:[#allocation5 + $0x358] sm:$0xff] }
  0x59   :  { %918 = vmatpush3.msra.mxu0 %v457_v35  ;;  %v96_v27 = vld [vmem:[#allocation2 + $0x1a8] sm:$0xff]  ;;  %v122_v35 = vld [vmem:[#allocation2 + $0x278] sm:$0xff]  ;;  %v343_v42 = vadd.f32 %v342_v30, %v144_v22  ;;  %v461_v11 = vld [vmem:[#allocation5 + $0x290] sm:$0xff] }
  0x5a   :  { %919 = vmatprep.subr.mxu0 %v472_v38  ;;  %v312_v56 = vrot.slane %v311_v49, 1  ;;  %v152_v28 = vld [vmem:[#allocation2 + $0x368] sm:$0xff]  ;;  %v502_v38 = vld [vmem:[#allocation5 + $0x3d8] sm:$0xff]  ;;  %v366_v44 = vadd.f32 %v122_v35, %v114_v34  ;;  %v127_v15 = vld [vmem:[#allocation2 + $0x2a0] sm:$0xff] }
  0x5b   :  { %920 = vmatpush3.msra.mxu0 %v456_v41  ;;  %v464_v33 = vld [vmem:[#allocation5 + $0x2a8] sm:$0xff]  ;;  %v240_v41 = vadd.f32 %v239_v29, %v88_v21  ;;  %v344_v54 = vadd.f32 %v343_v42, %v152_v28  ;;  %v462_v60 = vld [vmem:[#allocation5 + $0x298] sm:$0xff]  ;;  %v499_v18 = vld [vmem:[#allocation5 + $0x3c0] sm:$0xff] }
  0x5c   :  { %921 = vmatprep.subr.mxu0 %v471_v43  ;;  %v313_v1 = vadd.f32 %v312_v56, %v311_v49  ;;  %v448_v39 = vld [vmem:[#allocation5 + $0x228] sm:$0xff]  ;;  %v82_v43 = vld [vmem:[#allocation2 + $0x138] sm:$0xff]  ;;  %v264_v49 = vadd.f32 %v263_v37, %v74_v31  ;;  %v367_v56 = vadd.f32 %v366_v44, %v130_v36  ;;  %v79_v24 = vld [vmem:[#allocation2 + $0x120] sm:$0xff] }
  0x5d   :  { %922 = vmatpush3.msra.mxu0 %v455_v46  ;;  %v104_v40 = vld [vmem:[#allocation2 + $0x1e8] sm:$0xff]  ;;  %v463_v46 = vld [vmem:[#allocation5 + $0x2a0] sm:$0xff]  ;;  %v241_v53 = vadd.f32 %v240_v41, %v96_v27  ;;  %v98_v62 = vld [vmem:[#allocation2 + $0x1b8] sm:$0xff] }
  0x5e   :  { %923 = vmatprep.subr.mxu0 %v470_v48  ;;  %v533_v12 = vsel %vm530_vm0, %v313_v1, %v209_v55  ;;  %v160_v47 = vld [vmem:[#allocation2 + $0x3a8] sm:$0xff]  ;;  %v138_v48 = vld [vmem:[#allocation2 + $0x2f8] sm:$0xff]  ;;  %v265_v0 = vadd.f32 %v264_v49, %v82_v43  ;;  %v49_v31 = vld [vmem:[#allocation2 + $0x30] sm:$0xff] }
  0x5f   :  { %924 = vmatpush3.msra.mxu0 %v454_v50  ;;  %682 = vmatmul.mubr.f32.vlgmr.msra.gmra.mxu1 %v533_v12  ;;  %v47_v50 = vld [vmem:[#allocation2 + $0x20] sm:$0xff]  ;;  %v90_v55 = vld [vmem:[#allocation2 + $0x178] sm:$0xff]  ;;  %v345_v5 = vadd.f32 %v344_v54, %v160_v47  ;;  %v368_v6 = vadd.f32 %v367_v56, %v138_v48  ;;  %v484_v10 = vld [vmem:[#allocation5 + $0x348] sm:$0xff] }
  0x60   :  { %925 = vmatprep.subr.mxu0 %v469_v52  ;;  %951 = vmatpush3.msra.mxu1 %v490_v61  ;;  %v447_v52 = vld [vmem:[#allocation5 + $0x220] sm:$0xff]  ;;  %v168_v61 = vld [vmem:[#allocation2 + $0x3e8] sm:$0xff]  ;;  %v146_v63 = vld [vmem:[#allocation2 + $0x338] sm:$0xff] }
  0x61   :  { %926 = vmatpush3.msra.mxu0 %v453_v57  ;;  %952 = vmatprep.subr.mxu1 %v505_v2  ;;  %v55_v57 = vld [vmem:[#allocation2 + $0x60] sm:$0xff]  ;;  %v500_v2 = vld [vmem:[#allocation5 + $0x3c8] sm:$0xff]  ;;  %v106_v12 = vld [vmem:[#allocation2 + $0x1f8] sm:$0xff]  ;;  %v346_v21 = vadd.f32 %v345_v5, %v168_v61  ;;  %v369_v23 = vadd.f32 %v368_v6, %v146_v63 }
  0x62   :  { %927 = vmatprep.subr.mxu0 %v468_v58  ;;  %953 = vmatpush3.msra.mxu1 %v489_v8  ;;  %v63_v58 = vld [vmem:[#allocation2 + $0xa0] sm:$0xff]  ;;  %v223_v1 = vadd.f32 %v55_v57, %v47_v50  ;;  %v162_v22 = vld [vmem:[#allocation2 + $0x3b8] sm:$0xff]  ;;  %v460_v27 = vld [vmem:[#allocation5 + $0x288] sm:$0xff] }
  0x63   :  { %928 = vmatpush3.msra.mxu0 %v452_v59  ;;  %954 = vmatprep.subr.mxu1 %v504_v13  ;;  %v485_v59 = vld [vmem:[#allocation5 + $0x350] sm:$0xff]  ;;  %v111_v8 = vld [vmem:[#allocation2 + $0x220] sm:$0xff]  ;;  %v154_v13 = vld [vmem:[#allocation2 + $0x378] sm:$0xff]  ;;  %v347_v37 = vrot.slane %v346_v21, 4 }
  0x64   :  { %929 = vmatprep.subr.mxu0 %v467_v3  ;;  %955 = vmatpush3.msra.mxu1 %v488_v19  ;;  %v446_v3 = vld [vmem:[#allocation5 + $0x218] sm:$0xff]  ;;  %v224_v16 = vadd.f32 %v223_v1, %v63_v58  ;;  %v445_v19 = vld [vmem:[#allocation5 + $0x210] sm:$0xff]  ;;  %v444_v35 = vld [vmem:[#allocation5 + $0x208] sm:$0xff] }
  0x65   :  { %930 = vmatpush3.msra.mxu0 %v451_v4  ;;  %956 = vmatprep.subr.mxu1 %v503_v25  ;;  %v242_v4 = vadd.f32 %v241_v53, %v104_v40  ;;  %v135_v25 = vld [vmem:[#allocation2 + $0x2e0] sm:$0xff]  ;;  %v498_v34 = vld [vmem:[#allocation5 + $0x3b8] sm:$0xff]  ;;  %v73_v47 = vld [vmem:[#allocation2 + $0xf0] sm:$0xff] }
  0x66   :  { %931 = vmatprep.subr.mxu0 %v466_v9  ;;  %957 = vmatpush3.msra.mxu1 %v487_v32  ;;  %v119_v9 = vld [vmem:[#allocation2 + $0x260] sm:$0xff]  ;;  %v225_v29 = vadd.f32 %v224_v16, %v71_v7  ;;  %v57_v32 = vld [vmem:[#allocation2 + $0x70] sm:$0xff]  ;;  %v482_v42 = vld [vmem:[#allocation5 + $0x338] sm:$0xff] }
  0x67   :  { %932 = vmatpush3.msra.mxu0 %v450_v14  ;;  %958 = vmatprep.subr.mxu1 %v502_v38  ;;  %v266_v14 = vadd.f32 %v265_v0, %v90_v55  ;;  %v327_v17 = vadd.f32 %v119_v9, %v111_v8  ;;  %v370_v38 = vadd.f32 %v369_v23, %v154_v13  ;;  %v143_v40 = vld [vmem:[#allocation2 + $0x320] sm:$0xff]  ;;  %v170_v43 = vld [vmem:[#allocation2 + $0x3f8] sm:$0xff]  ;;  %v113_v48 = vld [vmem:[#allocation2 + $0x230] sm:$0xff] }
  0x68   :  { %933 = vmatprep.subr.mxu0 %v465_v20  ;;  %959 = vmatpush3.msra.mxu1 %v486_v45  ;;  %v243_v20 = vrot.slane %v242_v4, 4  ;;  %v249_v41 = vadd.f32 %v57_v32, %v49_v31  ;;  %v226_v45 = vadd.f32 %v225_v29, %v79_v24  ;;  %v497_v49 = vld [vmem:[#allocation5 + $0x3b0] sm:$0xff]  ;;  %v95_v53 = vld [vmem:[#allocation2 + $0x1a0] sm:$0xff] }
  0x69   :  { %934 = vmatpush3.msra.mxu0 %v449_v26  ;;  %960 = vmatprep.subr.mxu1 %v501_v51  ;;  %v483_v26 = vld [vmem:[#allocation5 + $0x340] sm:$0xff]  ;;  %v267_v28 = vadd.f32 %v266_v14, %v98_v62  ;;  %v328_v30 = vadd.f32 %v327_v17, %v127_v15  ;;  %v348_v51 = vadd.f32 %v347_v37, %v346_v21  ;;  %v121_v55 = vld [vmem:[#allocation2 + $0x270] sm:$0xff]  ;;  %v494_v37 = vld [vmem:[#allocation5 + $0x398] sm:$0xff] }
  0x6a   :  { %935 = vmatprep.subr.mxu0 %v464_v33  ;;  %v65_v33 = vld [vmem:[#allocation2 + $0xb0] sm:$0xff]  ;;  %961 = vmatpush3.msra.mxu1 %v485_v59  ;;  %v244_v36 = vadd.f32 %v243_v20, %v242_v4  ;;  %v151_v54 = vld [vmem:[#allocation2 + $0x360] sm:$0xff]  ;;  %v353_v63 = vadd.f32 %v121_v55, %v113_v48 }
  0x6b   :  { %936 = vmatpush3.msra.mxu0 %v448_v39  ;;  %v87_v39 = vld [vmem:[#allocation2 + $0x160] sm:$0xff]  ;;  %962 = vmatprep.subr.mxu1 %v500_v2  ;;  %v268_v44 = vadd.f32 %v267_v28, %v106_v12  ;;  %v250_v56 = vadd.f32 %v249_v41, %v65_v33  ;;  %v81_v62 = vld [vmem:[#allocation2 + $0x130] sm:$0xff]  ;;  %v349_v1 = vrot.slane %v348_v51, 2  ;;  %v496_v12 = vld [vmem:[#allocation5 + $0x3a8] sm:$0xff] }
  0x6c   :  { %937 = vmatprep.subr.mxu0 %v463_v46  ;;  %v329_v46 = vadd.f32 %v328_v30, %v135_v25  ;;  %963 = vmatpush3.msra.mxu1 %v484_v10  ;;  %v245_v50 = vrot.slane %v244_v36, 2  ;;  %v459_v57 = vld [vmem:[#allocation5 + $0x280] sm:$0xff]  ;;  %v129_v5 = vld [vmem:[#allocation2 + $0x2b0] sm:$0xff] }
  0x6d   :  { %938 = vmatpush3.msra.mxu0 %v447_v52  ;;  %v371_v52 = vadd.f32 %v370_v38, %v162_v22  ;;  %964 = vmatprep.subr.mxu1 %v499_v18  ;;  %v443_v58 = vld [vmem:[#allocation5 + $0x200] sm:$0xff]  ;;  %v269_v59 = vrot.slane %v268_v44, 4  ;;  %v251_v6 = vadd.f32 %v250_v56, %v73_v47  ;;  %v481_v7 = vld [vmem:[#allocation5 + $0x330] sm:$0xff]  ;;  %v350_v14 = vadd.f32 %v349_v1, %v348_v51  ;;  %v492_v56 = vld [vmem:[#allocation5 + $0x388] sm:$0xff] }
  0x6e   :  { %939 = vmatprep.subr.mxu0 %v462_v60  ;;  %v227_v60 = vadd.f32 %v226_v45, %v87_v39  ;;  %v330_v61 = vadd.f32 %v329_v46, %v143_v40  ;;  %965 = vmatpush3.msra.mxu1 %v483_v26  ;;  %v246_v0 = vadd.f32 %v245_v50, %v244_v36  ;;  %v159_v4 = vld [vmem:[#allocation2 + $0x3a0] sm:$0xff]  ;;  %v137_v17 = vld [vmem:[#allocation2 + $0x2f0] sm:$0xff] }
  0x6f   :  { %940 = vmatpush3.msra.mxu0 %v446_v3  ;;  %v372_v2 = vadd.f32 %v371_v52, %v170_v43  ;;  %v103_v3 = vld [vmem:[#allocation2 + $0x1e0] sm:$0xff]  ;;  %966 = vmatprep.subr.mxu1 %v498_v34  ;;  %v270_v8 = vadd.f32 %v269_v59, %v268_v44  ;;  %v252_v18 = vadd.f32 %v251_v6, %v81_v62  ;;  %v97_v23 = vld [vmem:[#allocation2 + $0x1b0] sm:$0xff] }
  0x70   :  { %941 = vmatprep.subr.mxu0 %v461_v11  ;;  %v228_v9 = vadd.f32 %v227_v60, %v95_v53  ;;  %v331_v10 = vadd.f32 %v330_v61, %v151_v54  ;;  %v89_v11 = vld [vmem:[#allocation2 + $0x170] sm:$0xff]  ;;  %967 = vmatpush3.msra.mxu1 %v482_v42  ;;  %v247_v13 = vrot.slane %v246_v0, 1  ;;  %v167_v16 = vld [vmem:[#allocation2 + $0x3e0] sm:$0xff]  ;;  %v354_v24 = vadd.f32 %v353_v63, %v129_v5  ;;  %v478_v42 = vld [vmem:[#allocation5 + $0x318] sm:$0xff] }
  0x71   :  { %942 = vmatpush3.msra.mxu0 %v445_v19  ;;  %v373_v15 = vrot.slane %v372_v2, 4  ;;  %968 = vmatprep.subr.mxu1 %v497_v49  ;;  %v480_v19 = vld [vmem:[#allocation5 + $0x328] sm:$0xff]  ;;  %v271_v20 = vrot.slane %v270_v8, 2  ;;  %v495_v25 = vld [vmem:[#allocation5 + $0x3a0] sm:$0xff]  ;;  %v145_v29 = vld [vmem:[#allocation2 + $0x330] sm:$0xff]  ;;  %v253_v30 = vadd.f32 %v252_v18, %v89_v11 }
  0x72   :  { %943 = vmatprep.subr.mxu0 %v460_v27  ;;  %v229_v21 = vadd.f32 %v228_v9, %v103_v3  ;;  %v332_v22 = vadd.f32 %v331_v10, %v159_v4  ;;  %969 = vmatpush3.msra.mxu1 %v481_v7  ;;  %v248_v26 = vadd.f32 %v247_v13, %v246_v0  ;;  %v351_v27 = vrot.slane %v350_v14, 1  ;;  %v479_v31 = vld [vmem:[#allocation5 + $0x320] sm:$0xff]  ;;  %v153_v40 = vld [vmem:[#allocation2 + $0x370] sm:$0xff]  ;;  %v476_v61 = vld [vmem:[#allocation5 + $0x308] sm:$0xff] }
  0x73   :  { %944 = vmatpush3.msra.mxu0 %v444_v35  ;;  %v374_v28 = vadd.f32 %v373_v15, %v372_v2  ;;  %970 = vmatprep.subr.mxu1 %v496_v12  ;;  %v272_v32 = vadd.f32 %v271_v20, %v270_v8  ;;  %v105_v35 = vld [vmem:[#allocation2 + $0x1f0] sm:$0xff]  ;;  %v355_v36 = vadd.f32 %v354_v24, %v137_v17  ;;  %v491_v1 = vld [vmem:[#allocation5 + $0x380] sm:$0xff] }
  0x74   :  { %945 = vmatprep.subr.mxu0 %v459_v57  ;;  %v230_v33 = vrot.slane %v229_v21, 4  ;;  %v333_v34 = vadd.f32 %v332_v22, %v167_v16  ;;  %971 = vmatpush3.msra.mxu1 %v480_v19  ;;  %v352_v38 = vadd.f32 %v351_v27, %v350_v14  ;;  %v254_v41 = vadd.f32 %v253_v30, %v97_v23  ;;  %v493_v47 = vld [vmem:[#allocation5 + $0x390] sm:$0xff]  ;;  %v475_v4 = vld [vmem:[#allocation5 + $0x300] sm:$0xff] }
  0x75   :  { %946 = vmatpush3.msra.mxu0 %v443_v58  ;;  %v375_v39 = vrot.slane %v374_v28, 2  ;;  %972 = vmatprep.subr.mxu1 %v495_v25  ;;  %v273_v43 = vrot.slane %v272_v32, 1  ;;  %v356_v46 = vadd.f32 %v355_v36, %v145_v29  ;;  %v161_v50 = vld [vmem:[#allocation2 + $0x3b0] sm:$0xff] }
  0x76   :  { %v231_v44 = vadd.f32 %v230_v33, %v229_v21  ;;  %v334_v45 = vrot.slane %v333_v34, 4  ;;  %973 = vmatpush3.msra.mxu1 %v479_v31  ;;  %v536_v48 = vsel %vm530_vm0, %v352_v38, %v248_v26  ;;  %v255_v51 = vadd.f32 %v254_v41, %v105_v35  ;;  %v477_v52 = vld [vmem:[#allocation5 + $0x310] sm:$0xff] }
  0x77   :  { %v376_v49 = vadd.f32 %v375_v39, %v374_v28  ;;  %974 = vmatprep.subr.mxu1 %v494_v37  ;;  %751 = vmatprep.mubr.f32.mxu0 %v536_v48  ;;  %v357_v55 = vadd.f32 %v356_v46, %v153_v40  ;;  %v274_v57 = vadd.f32 %v273_v43, %v272_v32  ;;  %v169_v59 = vld [vmem:[#allocation2 + $0x3f0] sm:$0xff]  ;;  %v844_v28 = vld [vmem:[%s1107_s2] ss:$0 sm:$0xff] }
  0x78   :  { %v232_v53 = vrot.slane %v231_v44, 2  ;;  %v335_v54 = vadd.f32 %v334_v45, %v333_v34  ;;  %975 = vmatpush3.msra.mxu1 %v478_v42  ;;  %v256_v60 = vrot.slane %v255_v51, 4 }
  0x79   :  { %v377_v58 = vrot.slane %v376_v49, 1  ;;  %976 = vmatprep.subr.mxu1 %v493_v47  ;;  %v358_v0 = vadd.f32 %v357_v55, %v161_v50 }
  0x7a   :  { %v233_v62 = vadd.f32 %v232_v53, %v231_v44  ;;  %v336_v63 = vrot.slane %v335_v54, 2  ;;  %977 = vmatpush3.msra.mxu1 %v477_v52  ;;  %v257_v3 = vadd.f32 %v256_v60, %v255_v51 }
  0x7b   :  { %v378_v2 = vadd.f32 %v377_v58, %v376_v49  ;;  %978 = vmatprep.subr.mxu1 %v492_v56  ;;  %v359_v7 = vadd.f32 %v358_v0, %v169_v59 }
  0x7c   :  { %v234_v5 = vrot.slane %v233_v62, 1  ;;  %v337_v6 = vadd.f32 %v336_v63, %v335_v54  ;;  %979 = vmatpush3.msra.mxu1 %v476_v61  ;;  %v258_v9 = vrot.slane %v257_v3, 2 }
  0x7d   :  { %v538_v8 = vsel %vm530_vm0, %v378_v2, %v274_v57  ;;  %980 = vmatprep.subr.mxu1 %v491_v1  ;;  %v360_v12 = vrot.slane %v359_v7, 4 }
  0x7e   :  { %821 = vmatprep.mubr.f32.mxu1 %v538_v8  ;;  %v235_v10 = vadd.f32 %v234_v5, %v233_v62  ;;  %v338_v11 = vrot.slane %v337_v6, 1  ;;  %981 = vmatpush3.msra.mxu1 %v475_v4  ;;  %v259_v13 = vadd.f32 %v258_v9, %v257_v3 }
  0x7f   :  { %v361_v15 = vadd.f32 %v360_v12, %v359_v7 }
  0x80   :  { %v339_v14 = vadd.f32 %v338_v11, %v337_v6  ;;  %v260_v17 = vrot.slane %v259_v13, 1 }
  0x81   :  { %v362_v18 = vrot.slane %v361_v15, 2 }
  0x82   :  { %v535_v16 = vsel %vm530_vm0, %v339_v14, %v235_v10  ;;  %v261_v20 = vadd.f32 %v260_v17, %v259_v13 }
  0x83   :  { %752 = vmatmul.mubr.f32.vlgmr.msra.gmra.mxu0 %v535_v16  ;;  %v363_v19 = vadd.f32 %v362_v18, %v361_v15 }
  0x85   :  { %v364_v21 = vrot.slane %v363_v19, 1 }
  0x87   :  { %v365_v22 = vadd.f32 %v364_v21, %v363_v19 }
  0x89   :  { %v537_v23 = vsel %vm530_vm0, %v365_v22, %v261_v20 }
  0x8a   :  { %822 = vmatmul.mubr.f32.vlgmr.msra.gmra.mxu1 %v537_v23 }
 0x116   :  { %v877_v24 = vpop.f32.mrf.mxu0 }
 0x118   :  { %v878_v26 = vpop.f32.mrf.mxu0 }
 0x119   :  { %v879_v27 = vadd.f32 %v878_v26, %v877_v24 }
 0x11b   :  { %v614_v32 = vadd.f32 %v879_v27, %v844_v28 }
 0x11f   :  { %v912_v25 = vpop.f32.mrf.mxu1 }
 0x121   :  { %v913_v29 = vpop.f32.mrf.mxu1 }
 0x122   :  { %v914_v33 = vadd.f32 %v913_v29, %v912_v25 }
 0x124   :  { %v684_v35 = vadd.f32 %v914_v33, %v614_v32 }
 0x143   :  { %v947_v30 = vpop.f32.mrf.mxu0 }
 0x145   :  { %v948_v31 = vpop.f32.mrf.mxu0 }
 0x146   :  { %v949_v34 = vadd.f32 %v948_v31, %v947_v30 }
 0x148   :  { %v754_v37 = vadd.f32 %v949_v34, %v684_v35 }
 0x14a   :  { %v982_v36 = vpop.f32.mrf.mxu1 }
 0x14c   :  { %v983_v38 = vpop.f32.mrf.mxu1 }
 0x14d   :  { %v984_v39 = vadd.f32 %v983_v38, %v982_v36 }
 0x14f   :  { %v824_v40 = vadd.f32 %v984_v39, %v754_v37 }
 0x151   :  { %827 = vst [vmem:[#allocation7] sm:$0x3] %v824_v40 }
 0x152   :  { %1043 = shalt.err (!%p1040_p0)
}
 0x153   :  { %837 = dma.vmem_to_hbm [thread:$0]  %s835_s27, 32, %s1108_s3, [#allocation4]  }
 0x154   :  { %1056 = dma.done.wait [#allocation4], 32  }
 0x155   :  { %1057 = vsyncadd [#allocation4], 4294967264 }
 0x156   :  { %841 = vsyncpa [#allocation3], 1 }
 0x157   :  { %842 = vsyncpa [#allocation6], 1 }
 0x158   :  { %843 = vsyncpa [#allocation4], 1 }

</bundles_post_ra>
